<compile_context>
chip_gen: v7x
topology: tpu7x:2x2x1
jax: 0.10.0
libtpu: 0.0.40
codegen_flags: <defaults>
</compile_context>

<pallas_src>
import functools
import math

import jax
import jax.numpy as jnp
from jax.experimental import pallas as pl
from jax.experimental.pallas import tpu as pltpu


# ---------------------------------------------------------------------------
# Kernel bodies:  z = x (+ a) * y ; out = LayerNorm_f32(z) * gamma + beta
# ---------------------------------------------------------------------------
def _layernorm_f32(z, g, b, eps):
    # z: (tm, D) f32 ; g, b: (1, D) f32
    mean = jnp.mean(z, axis=-1, keepdims=True)          # (tm, 1)
    zc = z - mean
    var = jnp.mean(zc * zc, axis=-1, keepdims=True)     # biased var (PyTorch)
    inv = jax.lax.rsqrt(var + eps)                      # EUP slot
    return (zc * inv) * g + b


def _kernel_scaled(a_ref, x_ref, y_ref, g_ref, b_ref, o_ref, *, eps):
    # a_ref: (1,) f32 scalar in SMEM ; x/y/o: (tm, D) tiles ; g/b: (1, D) f32
    a = a_ref[0]
    z = x_ref[...].astype(jnp.float32) + a * y_ref[...].astype(jnp.float32)
    o_ref[...] = _layernorm_f32(z, g_ref[...], b_ref[...], eps).astype(o_ref.dtype)


def _kernel_plain(x_ref, y_ref, g_ref, b_ref, o_ref, *, eps):
    z = x_ref[...].astype(jnp.float32) + y_ref[...].astype(jnp.float32)
    o_ref[...] = _layernorm_f32(z, g_ref[...], b_ref[...], eps).astype(o_ref.dtype)


# ---------------------------------------------------------------------------
# Tile selection: byte budget + minimum grid length + sublane alignment
# ---------------------------------------------------------------------------
def _choose_row_tile(N, D, itemsize, target_block_bytes, min_grid_steps=8):
    sub = max(8, 32 // itemsize)                      # f32:8, bf16:16, int8:32
    rdown = lambda n: (n // sub) * sub
    rup = lambda n: -(-n // sub) * sub
    tm_bytes = max(sub, rdown(target_block_bytes // max(1, D * itemsize)))
    tm_par = max(sub, rup(pl.cdiv(N, min_grid_steps)))  # keep >= ~8 grid steps
    tm = min(tm_bytes, tm_par)
    if tm >= N:
        return N                                      # full-dim block is legal
    return tm


# ---------------------------------------------------------------------------
# Wrapper
# ---------------------------------------------------------------------------
def sublayer_connection(x, y, gamma, beta, a=None, *, eps=1e-5,
                        target_block_bytes=2 * 1024 * 1024):
    """Fused residual (+ optional scale) + LayerNorm.

    x:     (..., D)  input to the sublayer connection
    y:     (..., D)  sublayer(x), computed by the caller (arbitrary callable)
    gamma: (D,)      LayerNorm weight
    beta:  (D,)      LayerNorm bias
    a:     scalar or None; None == enable_res_parameter=False (no scale)
    """
    orig_shape = x.shape
    D = orig_shape[-1]
    N = int(math.prod(orig_shape[:-1])) if len(orig_shape) > 1 else 1

    x2 = x.reshape(N, D)
    y2 = y.reshape(N, D)
    g2 = gamma.astype(jnp.float32).reshape(1, D)
    b2 = beta.astype(jnp.float32).reshape(1, D)

    itemsize = jnp.dtype(x.dtype).itemsize
    tm = _choose_row_tile(N, D, itemsize, target_block_bytes)
    grid = (pl.cdiv(N, tm),)

    # Resident footprint ~ (2 in + 1 out) streams x 2 buffers x block_bytes.
    block_bytes = tm * D * itemsize
    vmem_limit = int(min(32 * 2**20, max(16 * 2**20, 6 * block_bytes + (2 << 20))))

    row_spec = pl.BlockSpec((tm, D), lambda i: (i, 0))
    param_spec = pl.BlockSpec((1, D), lambda i: (0, 0))

    common = dict(
        out_shape=jax.ShapeDtypeStruct((N, D), x.dtype),
        grid=grid,
        out_specs=row_spec,
        compiler_params=pltpu.CompilerParams(
            dimension_semantics=("parallel",),
            vmem_limit_bytes=vmem_limit),
    )

    if a is None:
        # Specialized path: no SMEM operand, no per-element multiply.
        out = pl.pallas_call(
            functools.partial(_kernel_plain, eps=eps),
            in_specs=[row_spec, row_spec, param_spec, param_spec],
            **common,
        )(x2, y2, g2, b2)
    else:
        a_arr = jnp.reshape(jnp.asarray(a, dtype=jnp.float32), (1,))
        out = pl.pallas_call(
            functools.partial(_kernel_scaled, eps=eps),
            in_specs=[pl.BlockSpec(memory_space=pltpu.MemorySpace.SMEM),  # a
                      row_spec, row_spec, param_spec, param_spec],
            **common,
        )(a_arr, x2, y2, g2, b2)

    return out.reshape(orig_shape)


# ---------------------------------------------------------------------------
# Plain-JAX reference (f32 math) for sanity checking
# ---------------------------------------------------------------------------
def reference(x, y, gamma, beta, a=None, eps=1e-5):
    xf = x.astype(jnp.float32)
    yf = y.astype(jnp.float32)
    z = xf + (1.0 if a is None else jnp.float32(a)) * yf
    mean = jnp.mean(z, axis=-1, keepdims=True)
    var = jnp.mean((z - mean) ** 2, axis=-1, keepdims=True)
    return (z - mean) / jnp.sqrt(var + eps) * gamma + beta


if __name__ == "__main__":
    root = jax.random.PRNGKey(0)
    k_x, k_w, k_b, k_g, k_be = jax.random.split(root, 5)

    # --- f32, lane-dense hidden size (D = 128), small batch/seq ---
    B, S, D = 2, 8, 128
    x = jax.random.normal(k_x, (B, S, D), dtype=jnp.float32)

    # Caller-supplied sublayer (NOT part of SublayerConnection): a small linear.
    w = jax.random.normal(k_w, (D, D), dtype=jnp.float32) / math.sqrt(D)
    bias = jax.random.normal(k_b, (D,), dtype=jnp.float32) * 0.1
    sublayer = lambda t: t @ w + bias

    # SublayerConnection params (non-trivial affine; PyTorch init is g=1, b=0).
    gamma = 1.0 + 0.1 * jax.random.normal(k_g, (D,), dtype=jnp.float32)
    beta = 0.1 * jax.random.normal(k_be, (D,), dtype=jnp.float32)

    y = sublayer(x)

    # enable_res_parameter = True path (scaled residual, a initialised to 1e-8)
    a = jnp.float32(1e-8)
    out_en = jax.block_until_ready(sublayer_connection(x, y, gamma, beta, a))
    ref_en = reference(x, y, gamma, beta, a)
    assert out_en.shape == (B, S, D)
    assert jnp.allclose(out_en, ref_en, atol=1e-5, rtol=1e-5), \
        f"max abs err (enabled) {jnp.max(jnp.abs(out_en - ref_en))}"

    # enable_res_parameter = False path (plain residual, specialized kernel)
    out_dis = jax.block_until_ready(sublayer_connection(x, y, gamma, beta, None))
    ref_dis = reference(x, y, gamma, beta, None)
    assert jnp.allclose(out_dis, ref_dis, atol=1e-5, rtol=1e-5), \
        f"max abs err (disabled) {jnp.max(jnp.abs(out_dis - ref_dis))}"

    # --- bf16 HBM I/O with f32 internal math ---
    xb = x.astype(jnp.bfloat16)
    yb = y.astype(jnp.bfloat16)
    out_bf = jax.block_until_ready(
        sublayer_connection(xb, yb, gamma, beta, jnp.float32(0.5)))
    ref_bf = reference(xb, yb, gamma, beta, 0.5)
    assert out_bf.dtype == jnp.bfloat16
    assert jnp.allclose(out_bf.astype(jnp.float32), ref_bf, atol=3e-2, rtol=3e-2), \
        f"max abs err (bf16) {jnp.max(jnp.abs(out_bf.astype(jnp.float32) - ref_bf))}"

    # --- small non-lane-dense D (=32) still handled (masked stores) ---
    Ds = 32
    xs = jax.random.normal(k_x, (2, 8, Ds), dtype=jnp.float32)
    ys = jax.random.normal(k_w, (2, 8, Ds), dtype=jnp.float32)
    gs = jnp.ones((Ds,), jnp.float32)
    bs = jnp.zeros((Ds,), jnp.float32)
    out_s = jax.block_until_ready(sublayer_connection(xs, ys, gs, bs, None))
    ref_s = reference(xs, ys, gs, bs, None)
    assert jnp.allclose(out_s, ref_s, atol=1e-5, rtol=1e-5), \
        f"max abs err (small D) {jnp.max(jnp.abs(out_s - ref_s))}"

    print("KERNEL_OK")
</pallas_src>

<mosaic_0001>
module attributes {stable_mosaic.version = 11 : i64} {
  func.func @_kernel_scaled(%arg0: i32, %arg1: memref<1xf32, #tpu.memory_space<smem>>, %arg2: memref<8x128xf32, #tpu.memory_space<vmem>>, %arg3: memref<8x128xf32, #tpu.memory_space<vmem>>, %arg4: memref<1x128xf32, #tpu.memory_space<vmem>>, %arg5: memref<1x128xf32, #tpu.memory_space<vmem>>, %arg6: memref<8x128xf32, #tpu.memory_space<vmem>>) attributes {dimension_semantics = [#tpu.dimension_semantics<parallel>], iteration_bounds = array<i64: 2>, scalar_prefetch = 0 : i64, scratch_operands = 0 : i64, tpu.core_type = #tpu.core_type<tc>, window_params = [{transform_indices = @transform_0, window_bounds = array<i64: 1>}, {transform_indices = @transform_1, window_bounds = array<i64: 8, 128>}, {transform_indices = @transform_2, window_bounds = array<i64: 8, 128>}, {pipeline_mode = #tpu.pipeline_mode<synchronous>, transform_indices = @transform_3, window_bounds = array<i64: 1, 128>}, {pipeline_mode = #tpu.pipeline_mode<synchronous>, transform_indices = @transform_4, window_bounds = array<i64: 1, 128>}, {transform_indices = @transform_5, window_bounds = array<i64: 8, 128>}]} {
    %c0 = arith.constant 0 : index
    %0 = memref.load %arg1[%c0] : memref<1xf32, #tpu.memory_space<smem>>
    %c0_0 = arith.constant 0 : index
    %c0_1 = arith.constant 0 : index
    %1 = vector.load %arg2[%c0_0, %c0_1] : memref<8x128xf32, #tpu.memory_space<vmem>>, vector<8x128xf32>
    %c0_2 = arith.constant 0 : index
    %c0_3 = arith.constant 0 : index
    %2 = vector.load %arg3[%c0_2, %c0_3] : memref<8x128xf32, #tpu.memory_space<vmem>>, vector<8x128xf32>
    %3 = vector.broadcast %0 : f32 to vector<8x128xf32>
    %4 = arith.mulf %3, %2 : vector<8x128xf32>
    %5 = arith.addf %1, %4 : vector<8x128xf32>
    %c0_4 = arith.constant 0 : index
    %c0_5 = arith.constant 0 : index
    %6 = vector.load %arg4[%c0_4, %c0_5] : memref<1x128xf32, #tpu.memory_space<vmem>>, vector<1x128xf32>
    %c0_6 = arith.constant 0 : index
    %c0_7 = arith.constant 0 : index
    %7 = vector.load %arg5[%c0_6, %c0_7] : memref<1x128xf32, #tpu.memory_space<vmem>>, vector<1x128xf32>
    %cst = arith.constant dense<0.000000e+00> : vector<8xf32>
    %8 = vector.multi_reduction <add>, %5, %cst [1] : vector<8x128xf32> to vector<8xf32>
    %9 = vector.shape_cast %8 : vector<8xf32> to vector<8x1xf32>
    %cst_8 = arith.constant 1.280000e+02 : f32
    %10 = vector.broadcast %cst_8 : f32 to vector<8x1xf32>
    %11 = arith.divf %9, %10 : vector<8x1xf32>
    %12 = vector.broadcast %11 : vector<8x1xf32> to vector<8x128xf32>
    %13 = arith.subf %5, %12 : vector<8x128xf32>
    %14 = arith.mulf %13, %13 : vector<8x128xf32>
    %cst_9 = arith.constant dense<0.000000e+00> : vector<8xf32>
    %15 = vector.multi_reduction <add>, %14, %cst_9 [1] : vector<8x128xf32> to vector<8xf32>
    %16 = vector.shape_cast %15 : vector<8xf32> to vector<8x1xf32>
    %cst_10 = arith.constant 1.280000e+02 : f32
    %17 = vector.broadcast %cst_10 : f32 to vector<8x1xf32>
    %18 = arith.divf %16, %17 : vector<8x1xf32>
    %cst_11 = arith.constant 9.99999974E-6 : f32
    %19 = vector.broadcast %cst_11 : f32 to vector<8x1xf32>
    %20 = arith.addf %18, %19 : vector<8x1xf32>
    %21 = math.rsqrt %20 : vector<8x1xf32>
    %22 = vector.broadcast %21 : vector<8x1xf32> to vector<8x128xf32>
    %23 = arith.mulf %13, %22 : vector<8x128xf32>
    %24 = vector.broadcast %6 : vector<1x128xf32> to vector<8x128xf32>
    %25 = arith.mulf %23, %24 : vector<8x128xf32>
    %26 = vector.broadcast %7 : vector<1x128xf32> to vector<8x128xf32>
    %27 = arith.addf %25, %26 : vector<8x128xf32>
    %c0_12 = arith.constant 0 : index
    %c0_13 = arith.constant 0 : index
    %28 = vector.load %arg6[%c0_12, %c0_13] : memref<8x128xf32, #tpu.memory_space<vmem>>, vector<8x128xf32>
    tpu.vector_store %arg6[%c0_12, %c0_13], %27 {strides = array<i32>} : memref<8x128xf32, #tpu.memory_space<vmem>>, vector<8x128xf32>,
    return
  }
  func.func @transform_0(%arg0: i32) -> i32 {
    %c0_i32 = arith.constant 0 : i32
    %c0_i32_0 = arith.constant 0 : i32
    return %c0_i32 : i32
  }
  func.func @transform_1(%arg0: i32) -> (i32, i32) {
    %c0_i32 = arith.constant 0 : i32
    %c0_i32_0 = arith.constant 0 : i32
    return %arg0, %c0_i32 : i32, i32
  }
  func.func @transform_2(%arg0: i32) -> (i32, i32) {
    %c0_i32 = arith.constant 0 : i32
    %c0_i32_0 = arith.constant 0 : i32
    return %arg0, %c0_i32 : i32, i32
  }
  func.func @transform_3(%arg0: i32) -> (i32, i32) {
    %c0_i32 = arith.constant 0 : i32
    %c0_i32_0 = arith.constant 0 : i32
    %c0_i32_1 = arith.constant 0 : i32
    return %c0_i32, %c0_i32_0 : i32, i32
  }
  func.func @transform_4(%arg0: i32) -> (i32, i32) {
    %c0_i32 = arith.constant 0 : i32
    %c0_i32_0 = arith.constant 0 : i32
    %c0_i32_1 = arith.constant 0 : i32
    return %c0_i32, %c0_i32_0 : i32, i32
  }
  func.func @transform_5(%arg0: i32) -> (i32, i32) {
    %c0_i32 = arith.constant 0 : i32
    %c0_i32_0 = arith.constant 0 : i32
    return %arg0, %c0_i32 : i32, i32
  }
}

</mosaic_0001>

<bundles_post_ra>
// kernel: tpu_custom_call.1
= control target key start
LH: loop header
LB: loop body
LE: loop exit
PB: predicated region body
PF: predicated region fallthrough
CT: control target
= control target key end

     0   :  { %s878_s0 = inlined_call_operand.<no memory space> [shape: f32[1], index: 0, kind: input, shape index: {}]   ;;  %s879_s1 = inlined_call_operand.hbm [shape: f32[16,128], index: 1, kind: input, shape index: {}]   ;;  %s880_s2 = inlined_call_operand.hbm [shape: f32[16,128], index: 2, kind: input, shape index: {}]   ;;  %s881_s3 = inlined_call_operand.vmem [shape: f32[1,128], index: 3, kind: input, shape index: {}]   ;;  %s882_s4 = inlined_call_operand.vmem [shape: f32[1,128], index: 4, kind: input, shape index: {}]   ;;  %s883_s5 = inlined_call_operand.hbm [shape: f32[16,128], index: 5, kind: output, shape index: {}]  }
   0x1   :  { %10 = sst [smem:[#allocation2]] %s878_s0 }
   0x2   :  { %11 = vsyncpa [#allocation4], 0 }
   0x3   :  { %13 = vsyncpa [#allocation4 + $0x1], 0 }
   0x4   :  { %14 = vsyncpa [#allocation7], 0 }
   0x5   :  { %16 = vsyncpa [#allocation7 + $0x1], 0 }
   0x6   :  { %17 = vsyncpa [#allocation5], 0 }
   0x7   :  { %19 = vsyncpa [#allocation5 + $0x1], 0  ;;  %s658_s20 = smov 0   ;;  %s660_s21 = smov 0  }
   0x8   :  { %s662_s22 = smov 0   ;;  %s664_s23 = smov 0  }
   0x9 LB: > { %s679_s0 = sadd.s32 4294967295, %s620_s23   ;;  %s420_s24 = sadd.s32 4294967294, %s620_s23   ;;  %s620_s23 = sphi %s664_s23, %s902_s23   ;;  %s616_s22 = sphi %s662_s22, %s901_s22   ;;  %s612_s21 = sphi %s660_s21, %s900_s21   ;;  %s608_s20 = sphi %s658_s20, %s899_s20  }
   0xa   : > { %s683_s25 = sadd.s32 1, %s620_s23   ;;  %s53_s26 = sadd.s32 1, %s616_s22 }
   0xb   : > { %s50_s27 = ssub.s32 %s620_s23, %s683_s25  ;;  %p60_p0 = scmp.ne.s32.totalorder %s616_s22, %s612_s21 }
   0xc   : > { %p51_p1 = scmp.eq.s32.totalorder %s50_s27, 0  ;;  %p61_p2 = scmp.eq.s32.totalorder %s620_s23, 0 }
   0xd   : > { %p66_p3 = scmp.ne.s32.totalorder %s612_s21, %s608_s20  ;;  %p67_p4 = scmp.eq.s32.totalorder %s679_s0, 0 }
   0xe   : > { %s695_s28 = scalar_select %p51_p1, %s616_s22, %s53_s26  }
   0xf   : > { %p697_p5 = por %p61_p2, %p60_p0  ;;  %p701_p6 = por %p67_p4, %p66_p3 }
  0x10   : > { %p158_p7 = scmp.eq.s32.totalorder %s679_s0, 1  ;;  %p164_p8 = scmp.eq.s32.totalorder %s420_s24, 1 }
  0x11   : > { %s887_s30 = scalar_select %p701_p6, 1, 0 }
  0x12   : > { %p454_p10 = scmp.lt.s32.totalorder %s620_s23, 2  ;;  %p708_p11 = por %p158_p7, %p60_p0 }
  0x13   : > { %p712_p12 = por %p164_p8, %p66_p3  ;;  %s717_s8 = sand.u32 1, %s616_s22  }
  0x14   : > { %s888_s6 = scalar_select %p708_p11, 1, 0 }
  0x15   : > { %s889_s7 = scalar_select %p712_p12, 1, 0 }
  0x16   : > { %s424_s9 = sshll.u32 %s620_s23, 7  ;;  %s423_s10 = sshll.u32 %s717_s8, 3 }
  0x17   : > { %s726_s13 = scalar_lea.hbm %s879_s1, %s424_s9  ;;  %s197_s14 = scalar_lea.vmem [#allocation3], %s423_s10 }
  0x18   : > { %s204_s15 = sshll.u32 %s197_s14, 4  ;;  %p732_p13 = pnand %p454_p10, %p697_p5  ;;  %s736_s15 = int_to_ptr.vmem [resolvable:$true] %s204_s15 }
  0x19   : > { %s194_s17 = scalar_lea.sflag [#allocation4], %s717_s8  ;;  %s490_s18 = scalar_lea.hbm %s726_s13, 128 }
  0x1a   : > { %p491_p2 = scmp.ne.s32.totalorder %s726_s13, %s490_s18  ;;  %p492_p3 = pneg %p732_p13 }
  0x1b   : > { %s495_s26 = scalar_lea.hbm %s879_s1, 256  ;;  %p496_p5 = scmp.lt.u32.totalorder %s726_s13, %s879_s1 }
  0x1c   : > { %p493_p4 = pnand %p492_p3, %p491_p2  ;;  %p497_p8 = scmp.lt.u32.totalorder %s495_s26, %s490_s18 }
  0x1d   : > { %p499_p9 = scmp.lt.u32.totalorder %s490_s18, %s726_s13 }
  0x1e   : > { %p494_p7 = pneg %p493_p4  ;;  %p498_p10 = por %p497_p8, %p496_p5 }
  0x20   : > { %p500_p0 = por %p499_p9, %p498_p10 }
  0x22   : > { %p501_p1 = pnand %p500_p0, %p494_p7 }
  0x24   : > { %504 = shalt.err (!%p501_p1)
}
  0x25   : > { %s505_s11 = scalar_lea.vmem %s736_s15, 128  ;;  %s622_s12 = smov [#allocation3]  }
  0x26   : > { %p506_p2 = scmp.ne.s32.totalorder %s736_s15, %s505_s11  ;;  %s510_s14 = sshll.u32 %s622_s12, 4  ;;  %s511_s14 = int_to_ptr.vmem [resolvable:$false] %s510_s14 }
  0x27   : > { %s512_s19 = scalar_lea.vmem %s511_s14, 256  ;;  %p513_p11 = scmp.lt.s32.totalorder %s736_s15, %s511_s14 }
  0x28   : > { %p508_p4 = pnand %p506_p2, %p492_p3  ;;  %p514_p5 = scmp.lt.s32.totalorder %s512_s19, %s505_s11 }
  0x2a   : > { %p509_p12 = pneg %p508_p4  ;;  %p515_p8 = por %p514_p5, %p513_p11 }
  0x2c   : > { %p516_p9 = pnand %p515_p8, %p509_p12 }
  0x2e   : > { %519 = shalt.err (!%p516_p9)
}
  0x2f   : > { %446 = dma.hbm_to_vmem [thread:$0]  (!%p732_p13), %s726_s13, 128, %s736_s15, %s194_s17  }
  0x30   : > { %p891_p0 = scmp.lt.s32.totalorder %s620_s23, 3  ;;  %p892_p1 = scmp.ge.s32.totalorder %s620_s23, 1 }
  0x31   : > { %s779_s27 = scalar_lea.hbm %s880_s2, %s424_s9  ;;  %s215_s29 = scalar_lea.vmem [#allocation6], %s423_s10 }
  0x32   : > { %p770_p7 = pnand %p892_p1, %p891_p0  ;;  %s222_s11 = sshll.u32 %s215_s29, 4  ;;  %s223_s11 = int_to_ptr.vmem [resolvable:$true] %s222_s11 }
  0x33   : > { %s212_s13 = scalar_lea.sflag [#allocation7], %s717_s8  ;;  %s520_s15 = scalar_lea.hbm %s779_s27, 128 }
  0x34   : > { %s893_s18 = scalar_select %p770_p7, 1, 0 }
  0x35   : > { %p521_p11 = scmp.ne.s32.totalorder %s779_s27, %s520_s15  ;;  %s525_s9 = scalar_lea.hbm %s880_s2, 256 }
  0x36   : > { %p526_p2 = scmp.lt.u32.totalorder %s779_s27, %s880_s2  ;;  %p527_p4 = scmp.lt.u32.totalorder %s525_s9, %s520_s15 }
  0x37   : > { %p523_p12 = pnand %p521_p11, %p492_p3  ;;  %p529_p8 = scmp.lt.u32.totalorder %s520_s15, %s779_s27 }
  0x38   : > { %p528_p5 = por %p527_p4, %p526_p2 }
  0x39   : > { %p524_p10 = pneg %p523_p12 }
  0x3a   : > { %p530_p9 = por %p529_p8, %p528_p5 }
  0x3c   : > { %p531_p0 = pnand %p530_p9, %p524_p10 }
  0x3e   : > { %534 = shalt.err (!%p531_p0)
}
  0x3f   : > { %s535_s8 = scalar_lea.vmem %s223_s11, 128  ;;  %s623_s10 = smov [#allocation6]  }
  0x40   : > { %p536_p1 = scmp.ne.s32.totalorder %s223_s11, %s535_s8  ;;  %s540_s24 = sshll.u32 %s623_s10, 4  ;;  %s541_s24 = int_to_ptr.vmem [resolvable:$false] %s540_s24 }
  0x41   : > { %s542_s26 = scalar_lea.vmem %s541_s24, 256  ;;  %p543_p6 = scmp.lt.s32.totalorder %s223_s11, %s541_s24 }
  0x42   : > { %p538_p11 = pnand %p536_p1, %p492_p3  ;;  %p544_p7 = scmp.lt.s32.totalorder %s542_s26, %s535_s8 }
  0x44   : > { %p539_p12 = pneg %p538_p11  ;;  %p545_p2 = por %p544_p7, %p543_p6 }
  0x46   : > { %p546_p4 = pnand %p545_p2, %p539_p12 }
  0x48   : > { %549 = shalt.err (!%p546_p4)
}
  0x49   : > { %449 = dma.hbm_to_vmem [thread:$0]  (!%p732_p13), %s779_s27, 128, %s223_s11, %s212_s13  }
  0x4a   : > { %p894_p10 = scmp.ne.s32.totalorder %s893_s18, 0 }
  0x4b   : > { %s806_s29 = sand.u32 (!%p894_p10), 1, %s612_s21   ;;  %p895_p6 = scmp.ne.s32.totalorder (!%p894_p10), %s887_s30, 0 }
  0x4c   : > { %231 = sbr.rel (%p894_p10) target bundleno = 422 (0x1a6), region = 40  ;;  %s809_s15 = sshll.u32 (!%p894_p10), %s806_s29, 3 }
  0x4d   : > { %s234_s17 = scalar_lea.sflag (!%p894_p10), [#allocation4], %s806_s29  ;;  %s237_s12 = scalar_lea.vmem (!%p894_p10), [#allocation3], %s809_s15 }
  0x53   : > { %595 = dma.done.wait (%p895_p6), %s234_s17, 128  }
  0x54   : > { %597 = vsyncadd (%p895_p6), %s234_s17, 4294967168  ;;  %s243_s16 = scalar_lea.sflag [#allocation7], %s806_s29  ;;  %s246_s18 = scalar_lea.vmem [#allocation6], %s809_s15 }
  0x55   : > { %599 = dma.done.wait (%p895_p6), %s243_s16, 128  }
  0x56   : > { %601 = vsyncadd (%p895_p6), %s243_s16, 4294967168  ;;  %s278_s27 = sld [smem:[#allocation2]]  ;;  %v279_v0 = vld [vmem:[%s237_s12] sm:$0xff]  ;;  %v280_v1 = vld [vmem:[%s246_s18] sm:$0xff]  ;;  %s434_s14 = sshll.u32 %s679_s0, 7 }
  0x57   : > { %v431_v13 = vld [vmem:[%s881_s3] ss:$0 sm:$0xff]  ;;  %s277_s19 = scalar_lea.vmem [#allocation8], %s809_s15  ;;  %s834_s26 = scalar_lea.hbm %s883_s5, %s434_s14 }
  0x58   : > { %v432_v15 = vld [vmem:[%s882_s4] ss:$0 sm:$0xff]  ;;  %s327_s8 = sshll.u32 %s277_s19, 4  ;;  %s314_s17 = scalar_lea.sflag [#allocation5], %s806_s29  ;;  %s836_s8 = int_to_ptr.vmem [resolvable:$true] %s327_s8 }
  0x59   : > { %s550_s12 = scalar_lea.vmem %s836_s8, 128  ;;  %p896_p3 = scmp.ne.s32.totalorder %s888_s6, 0 }
  0x5a   : > { %p551_p13 = scmp.ne.s32.totalorder %s836_s8, %s550_s12  ;;  %s624_s0 = smov [#allocation8]  }
  0x5b   : > { %s554_s15 = sshll.u32 %s624_s0, 4  ;;  %s555_s15 = int_to_ptr.vmem [resolvable:$false] %s554_s15 }
  0x5c   : > { %v281_v2 = vstv %s278_s27  ;;  %p552_p7 = pnand %p551_p13, %p896_p3  ;;  %s556_s16 = scalar_lea.vmem %s555_s15, 256 }
  0x5d   : > { %v282_v3 = vmul.f32 %v281_v2, %v280_v1  ;;  %p557_p8 = scmp.lt.s32.totalorder %s836_s8, %s555_s15  ;;  %p558_p9 = scmp.lt.s32.totalorder %s556_s16, %s550_s12 }
  0x5e   : > { %p553_p5 = pneg %p552_p7 }
  0x5f   : > { %v283_v4 = vadd.f32 %v282_v3, %v279_v0  ;;  %p559_p0 = por %p558_p9, %p557_p8 }
  0x61   : > { %286 = vadd.xlane.f32.xlu0 %v283_v4  ;;  %p560_p1 = pnand %p559_p0, %p553_p5 }
  0xee   : > { %v287_v5 = vpop.xlane.xlu0 %286 }
  0xef   : > { %v289_v6 = vmul.f32 0.0078125, %v287_v5 }
  0xf1   : > { %v290_v7 = vsub.f32 %v283_v4, %v289_v6 }
  0xf3   : > { %v291_v8 = vmul.f32 %v290_v7, %v290_v7 }
  0xf5   : > { %292 = vadd.xlane.f32.xlu0 %v291_v8 }
 0x182   : > { %v293_v9 = vpop.xlane.xlu0 %292 }
 0x183   : > { %v294_v10 = vmul.f32 0.0078125, %v293_v9 }
 0x185   : > { %v295_v11 = vadd.f32 1e-05, %v294_v10 }
 0x187   : > { %488 = vrsqrt.f32 %v295_v11 }
 0x191   : > { %v489_v12 = vpop.eup %488 }
 0x192   : > { %v297_v14 = vmul.f32 %v489_v12, %v290_v7 }
 0x194   : > { %v304_v16 = vmul.f32 %v431_v13, %v297_v14 }
 0x196   : > { %v311_v17 = vadd.f32 %v432_v15, %v304_v16 }
 0x198   : > { %312 = vst [vmem:[%s277_s19] sm:$0xff] %v311_v17 }
 0x199   : > { %563 = shalt.err (!%p560_p1)
}
 0x19a   : > { %s564_s29 = scalar_lea.hbm %s834_s26, 128  ;;  %s568_s30 = scalar_lea.hbm %s883_s5, 256 }
 0x19b   : > { %p565_p11 = scmp.ne.s32.totalorder %s834_s26, %s564_s29  ;;  %p569_p4 = scmp.lt.u32.totalorder %s834_s26, %s883_s5 }
 0x19c   : > { %p570_p10 = scmp.lt.u32.totalorder %s568_s30, %s564_s29  ;;  %p572_p13 = scmp.lt.u32.totalorder %s564_s29, %s834_s26 }
 0x19d   : > { %p566_p12 = pnand %p565_p11, %p896_p3 }
 0x19e   : > { %p571_p6 = por %p570_p10, %p569_p4 }
 0x19f   : > { %p567_p2 = pneg %p566_p12 }
 0x1a0   : > { %p573_p7 = por %p572_p13, %p571_p6 }
 0x1a2   : > { %p574_p5 = pnand %p573_p7, %p567_p2 }
 0x1a4   : > { %577 = shalt.err (!%p574_p5)
}
 0x1a5   : > { %441 = dma.vmem_to_hbm [thread:$0]  (%p896_p3), %s836_s8, 128, %s834_s26, %s314_s17  }
 0x1a6 PF: > { %s339_s9 = sand.u32 1, %s608_s20   ;;  %p897_p8 = scmp.ne.s32.totalorder %s889_s7, 0 }
 0x1a7   : > { %p898_p9 = scmp.ge.s32.totalorder %s620_s23, 2  ;;  %s340_s14 = scalar_lea.sflag [#allocation5], %s339_s9 }
 0x1a9   : > { %p451_p0 = pnand %p898_p9, %p897_p8 }
 0x1ab   : > { %603 = dma.done.wait (!%p451_p0), %s340_s14, 128  }
 0x1ac   : > { %605 = vsyncadd (!%p451_p0), %s340_s14, 4294967168  ;;  %p22_p1 = scmp.ge.s32.totalorder %s683_s25, 4   ;;  %s899_s20 = smov %s612_s21 }
 0x1ad   : > { %s900_s21 = smov %s616_s22  ;;  %s901_s22 = smov %s695_s28 }
 0x1ae   : > { %s902_s23 = smov %s683_s25  ;;  %24 = sbr.rel (!%p22_p1) target bundleno = 9 (0x9), region = 98 }
 0x1b5   :  { %345 = vsyncpa [#allocation4], 1 }
 0x1b6   :  { %347 = vsyncpa [#allocation4 + $0x1], 1 }
 0x1b7   :  { %348 = vsyncpa [#allocation7], 1 }
 0x1b8   :  { %350 = vsyncpa [#allocation7 + $0x1], 1 }
 0x1b9   :  { %351 = vsyncpa [#allocation5], 1 }
 0x1ba   :  { %353 = vsyncpa [#allocation5 + $0x1], 1 }

</bundles_post_ra>
